<compile_context>
chip_gen: v7x
topology: tpu7x:2x2x1
jax: 0.10.0
libtpu: 0.0.40
codegen_flags: <defaults>
</compile_context>

<pallas_src>
import functools

import jax
import jax.numpy as jnp
from jax import lax
from jax.experimental import pallas as pl
from jax.experimental.pallas import tpu as pltpu

MARGIN = 1.0


def _round_up(n, m):
    return ((n + m - 1) // m) * m


def _physical_vmem_bytes():
    try:
        return int(pltpu.get_tpu_info().vmem_capacity_bytes)
    except Exception:
        # Conservative fallback (v7x per-core VMEM).
        return 64 * 1024 * 1024


def _perm_block(i, n_blocks):
    """Triangle load-balancing permutation: pairs block b with block n-1-b.

    Pure integer arithmetic (no select) so it lowers cleanly both inside
    kernels and inside BlockSpec index_maps. Identity for n_blocks <= 2.
    """
    if n_blocks <= 2:
        return i
    half = i // 2
    odd = i % 2
    return half + odd * (n_blocks - 1 - 2 * half)


def _fold_lanes(v, width):
    """Fold (rows, width) -> (rows, 128) with aligned lane-tile adds (VPU only);
    the expensive cross-lane reduce is deferred to the final grid step."""
    out = v[:, 0:128]
    for c in range(1, width // 128):
        out = out + v[:, c * 128:(c + 1) * 128]
    return out


# ---------------------------------------------------------------------------
# Pass 1: neg_sum[i] = sum_{k: t_k != t_i, k < B} exp(margin - dist[i, k])
# Grid (i parallel, j arbitrary). Partial sums accumulate in a (tile, 128)
# scratch; the lane reduce + (tile, 1) store happen once per row block.
# ---------------------------------------------------------------------------
def _neg_sum_kernel(x_i_ref, x_j_ref, mag_i_ref, mag_j_ref, t_i_ref, t_j_ref,
                    ns_ref, acc_ref, *, margin, tile, batch, x_col_resident):
    j_blk = pl.program_id(1)

    @pl.when(j_blk == 0)
    def _init():
        acc_ref[...] = jnp.zeros_like(acc_ref)

    j0 = pl.multiple_of(j_blk * tile, tile)
    x_j = x_j_ref[pl.ds(j0, tile), :] if x_col_resident else x_j_ref[...]

    # Gram tile on the MXU: bf16 operands, f32 accumulation, no transpose.
    sim = lax.dot_general(
        x_i_ref[...], x_j,
        dimension_numbers=(((1,), (1,)), ((), ())),
        preferred_element_type=jnp.float32,
    )                                                        # (tile, tile)

    mag_j = mag_j_ref[:, pl.ds(j0, tile)]                    # (1, tile)
    t_j = t_j_ref[:, pl.ds(j0, tile)]                        # (1, tile)
    dist = jnp.sqrt(jnp.maximum(mag_i_ref[...] + mag_j - 2.0 * sim, 0.0))

    # Only different-label columns inside the real batch count as negatives.
    col_idx = j0 + lax.broadcasted_iota(jnp.int32, dist.shape, 1)
    neg_mask = jnp.logical_and(t_j != t_i_ref[...], col_idx < batch)
    neg = jnp.where(neg_mask, jnp.exp(margin - dist), 0.0)

    acc_ref[...] += _fold_lanes(neg, tile)

    @pl.when(j_blk == pl.num_programs(1) - 1)
    def _finalize():
        ns_ref[...] = jnp.sum(acc_ref[...], axis=1, keepdims=True)


# ---------------------------------------------------------------------------
# Pass 2: per-row sums of relu(log(ns_i + ns_j) + dist_ij)^2 over positive
# pairs (i < j, same label). Only upper-triangle tiles do work; row blocks
# are visited through the load-balancing permutation.
# ---------------------------------------------------------------------------
def _loss_kernel(x_i_ref, x_j_ref, mag_i_ref, mag_j_ref, t_i_ref, t_j_ref,
                 ns_i_ref, ns_j_ref, loss_ref, acc_ref,
                 *, tile, batch, n_blocks, x_col_resident):
    i_blk = _perm_block(pl.program_id(0), n_blocks)   # physical row block
    j_blk = pl.program_id(1)

    @pl.when(j_blk == 0)
    def _init():
        acc_ref[...] = jnp.zeros_like(acc_ref)

    # Lower-triangle tiles contain no (i < j) pairs — skip all heavy work.
    @pl.when(j_blk >= i_blk)
    def _compute():
        j0 = pl.multiple_of(j_blk * tile, tile)
        x_j = x_j_ref[pl.ds(j0, tile), :] if x_col_resident else x_j_ref[...]
        sim = lax.dot_general(
            x_i_ref[...], x_j,
            dimension_numbers=(((1,), (1,)), ((), ())),
            preferred_element_type=jnp.float32,
        )
        mag_j = mag_j_ref[:, pl.ds(j0, tile)]
        dist = jnp.sqrt(jnp.maximum(mag_i_ref[...] + mag_j - 2.0 * sim, 0.0))

        # l_n = log(ns_i + ns_j); -inf (no negatives anywhere) is clamped to 0
        # by the relu below, matching the reference semantics.
        l_n = jnp.log(ns_i_ref[...] + ns_j_ref[:, pl.ds(j0, tile)])

        gi = i_blk * tile + lax.broadcasted_iota(jnp.int32, dist.shape, 0)
        gj = j0 + lax.broadcasted_iota(jnp.int32, dist.shape, 1)
        pos = ((t_j_ref[:, pl.ds(j0, tile)] == t_i_ref[...])
               & (gi < gj) & (gj < batch))                   # gi < gj < batch

        term = jnp.maximum(l_n + dist, 0.0) ** 2
        acc_ref[...] += _fold_lanes(jnp.where(pos, term, 0.0), tile)

    @pl.when(j_blk == pl.num_programs(1) - 1)
    def _finalize():
        loss_ref[...] = jnp.sum(acc_ref[...], axis=1, keepdims=True)


# ---------------------------------------------------------------------------
# Wrapper
# ---------------------------------------------------------------------------
def lifted_structure_loss(inputs, targets, margin=MARGIN, x_col_resident=None):
    """inputs: (B, D) float, targets: (B,) int labels -> scalar float32."""
    B, D = inputs.shape
    tile = 256 if B > 128 else 128          # lane-dense, MXU-friendly tiles
    Bp = _round_up(B, tile)
    Dp = _round_up(D, 128)
    n_blocks = Bp // tile

    # f32 copy only for exact squared norms; bf16 copy feeds the MXU
    # (default MXU precision truncates to bf16 anyway, so this only halves
    # HBM/VMEM traffic — no extra precision loss).
    x_f32 = jnp.pad(inputs.astype(jnp.float32), ((0, Bp - B), (0, Dp - D)))
    x = x_f32.astype(jnp.bfloat16)
    t = jnp.pad(targets.astype(jnp.int32), (0, Bp - B), constant_values=-1)

    mag = jnp.sum(x_f32 * x_f32, axis=1)
    mag_col = mag.reshape(Bp, 1)
    mag_row = mag.reshape(1, Bp)
    t_col = t.reshape(Bp, 1)
    t_row = t.reshape(1, Bp)

    # Generation-aware VMEM budget; decide whether the column operand can be
    # fully VMEM-resident (DMAed once, reused for every grid step).
    phys_vmem = _physical_vmem_bytes()
    vmem_limit = int(min(phys_vmem * 3 // 4, 100 * 1024 * 1024))
    if x_col_resident is None:
        resident_need = (2 * Bp * Dp * 2        # resident x_col (2 bufs, bf16)
                         + 2 * tile * Dp * 2    # streamed x_row (2 bufs, bf16)
                         + 12 * tile * tile * 4  # f32 tile intermediates
                         + tile * 128 * 4)      # accumulator scratch
        x_col_resident = resident_need <= int(vmem_limit * 0.6)

    grid = (n_blocks, n_blocks)

    x_row_spec = pl.BlockSpec((tile, Dp), lambda i, j: (i, 0))
    if x_col_resident:
        x_col_spec_p1 = pl.BlockSpec((Bp, Dp), lambda i, j: (0, 0))
        x_col_spec_p2 = x_col_spec_p1
    else:
        x_col_spec_p1 = pl.BlockSpec((tile, Dp), lambda i, j: (j, 0))
        # Pass 2 skips j < row_block tiles; clamp the index so skipped steps
        # reuse the previously fetched block instead of re-DMAing it.
        x_col_spec_p2 = pl.BlockSpec(
            (tile, Dp),
            lambda i, j: (jnp.maximum(_perm_block(i, n_blocks), j), 0))

    col_vec_spec = pl.BlockSpec((tile, 1), lambda i, j: (i, 0))
    row_vec_spec = pl.BlockSpec((1, Bp), lambda i, j: (0, 0))   # tiny, resident
    out_col_spec = pl.BlockSpec((tile, 1), lambda i, j: (i, 0))

    # Pass-2 row-block specs go through the load-balancing permutation so the
    # two TensorCores (v7x) split the triangular work evenly.
    perm_x_row_spec = pl.BlockSpec(
        (tile, Dp), lambda i, j: (_perm_block(i, n_blocks), 0))
    perm_col_vec_spec = pl.BlockSpec(
        (tile, 1), lambda i, j: (_perm_block(i, n_blocks), 0))
    perm_out_spec = pl.BlockSpec(
        (tile, 1), lambda i, j: (_perm_block(i, n_blocks), 0))

    cparams = pltpu.CompilerParams(
        dimension_semantics=("parallel", "arbitrary"),
        vmem_limit_bytes=vmem_limit,
    )

    # Pass 1: per-row negative-pair exponential sums.
    neg_sum = pl.pallas_call(
        functools.partial(_neg_sum_kernel, margin=float(margin), tile=tile,
                          batch=B, x_col_resident=x_col_resident),
        grid=grid,
        in_specs=[x_row_spec, x_col_spec_p1, col_vec_spec, row_vec_spec,
                  col_vec_spec, row_vec_spec],
        out_specs=out_col_spec,
        out_shape=jax.ShapeDtypeStruct((Bp, 1), jnp.float32),
        scratch_shapes=[pltpu.VMEM((tile, 128), jnp.float32)],
        compiler_params=cparams,
    )(x, x, mag_col, mag_row, t_col, t_row)

    ns_col = neg_sum                 # (Bp, 1)
    ns_row = neg_sum.reshape(1, Bp)  # (1, Bp)

    # Pass 2: per-row positive-pair loss sums (upper-triangle tiles only).
    row_loss = pl.pallas_call(
        functools.partial(_loss_kernel, tile=tile, batch=B,
                          n_blocks=n_blocks, x_col_resident=x_col_resident),
        grid=grid,
        in_specs=[perm_x_row_spec, x_col_spec_p2, perm_col_vec_spec,
                  row_vec_spec, perm_col_vec_spec, row_vec_spec,
                  perm_col_vec_spec, row_vec_spec],
        out_specs=perm_out_spec,
        out_shape=jax.ShapeDtypeStruct((Bp, 1), jnp.float32),
        scratch_shapes=[pltpu.VMEM((tile, 128), jnp.float32)],
        compiler_params=cparams,
    )(x, x, mag_col, mag_row, t_col, t_row, ns_col, ns_row)

    # Positive-pair count from labels, off the kernel path (O(B) data).
    # NOTE: like the PyTorch module, a batch with no positive pairs is
    # assumed not to occur (would divide by zero).
    same = targets[:, None] == targets[None, :]
    counter = (jnp.sum(same.astype(jnp.float32)) - B) * 0.5
    return jnp.sum(row_loss) / (2.0 * counter)


# ---------------------------------------------------------------------------
# Pure-JAX reference mirroring the PyTorch loop semantics.
# ---------------------------------------------------------------------------
def _reference(inputs, targets, margin=MARGIN):
    x = inputs.astype(jnp.float32)
    B = x.shape[0]
    mag = jnp.sum(x * x, axis=1)
    sim = x @ x.T
    dist = jnp.sqrt(jnp.maximum(mag[:, None] + mag[None, :] - 2.0 * sim, 0.0))
    same = targets[:, None] == targets[None, :]
    neg_exp = jnp.where(same, 0.0, jnp.exp(margin - dist))
    neg_sum = jnp.sum(neg_exp, axis=1)
    pair_ln = jnp.log(neg_sum[:, None] + neg_sum[None, :])
    ii = jnp.arange(B)
    pos = same & (ii[:, None] < ii[None, :])
    term = jnp.maximum(pair_ln + dist, 0.0) ** 2
    loss = jnp.sum(jnp.where(pos, term, 0.0))
    counter = jnp.sum(pos.astype(jnp.float32))
    return loss / (2.0 * counter)


if __name__ == "__main__":
    key = jax.random.PRNGKey(0)
    k1, k2 = jax.random.split(key)

    # Small smoke test (module input shape (B, D) with labels containing
    # positive pairs, as the module assumes counter > 0).
    B, D = 8, 32
    inputs = jax.random.normal(k1, (B, D), dtype=jnp.float32)
    targets = jnp.array([0, 0, 1, 1, 2, 2, 3, 3], dtype=jnp.int32)

    loss = jax.block_until_ready(lifted_structure_loss(inputs, targets))
    ref = jax.block_until_ready(_reference(inputs, targets))
    assert jnp.allclose(loss, ref, rtol=3e-2, atol=1e-4), (loss, ref)

    # Multi-tile check: exercises the triangular-permuted grid, the clamped
    # streaming path and the VMEM-resident path on a padded batch.
    B2, D2 = 700, 96
    inputs2 = jax.random.normal(k2, (B2, D2), dtype=jnp.float32)
    targets2 = (jnp.arange(B2) % 64).astype(jnp.int32)
    ref2 = jax.block_until_ready(_reference(inputs2, targets2))
    for resident in (False, True):
        out2 = jax.block_until_ready(
            lifted_structure_loss(inputs2, targets2, x_col_resident=resident))
        assert jnp.allclose(out2, ref2, rtol=3e-2, atol=1e-4), (resident, out2, ref2)

    print("KERNEL_OK")
</pallas_src>

<mosaic_0001>
module attributes {stable_mosaic.version = 11 : i64} {
  func.func @_neg_sum_kernel(%arg0: i32, %arg1: i32, %arg2: memref<128x128xbf16, #tpu.memory_space<vmem>>, %arg3: memref<128x128xbf16, #tpu.memory_space<vmem>>, %arg4: memref<128x1xf32, #tpu.memory_space<vmem>>, %arg5: memref<1x128xf32, #tpu.memory_space<vmem>>, %arg6: memref<128x1xi32, #tpu.memory_space<vmem>>, %arg7: memref<1x128xi32, #tpu.memory_space<vmem>>, %arg8: memref<128x1xf32, #tpu.memory_space<vmem>>, %arg9: memref<128x128xf32, #tpu.memory_space<vmem>>) attributes {dimension_semantics = [#tpu.dimension_semantics<parallel>, #tpu.dimension_semantics<arbitrary>], iteration_bounds = array<i64: 1, 1>, scalar_prefetch = 0 : i64, scratch_operands = 1 : i64, tpu.core_type = #tpu.core_type<tc>, window_params = [{transform_indices = @transform_0, window_bounds = array<i64: 128, 128>}, {pipeline_mode = #tpu.pipeline_mode<synchronous>, transform_indices = @transform_1, window_bounds = array<i64: 128, 128>}, {transform_indices = @transform_2, window_bounds = array<i64: 128, 1>}, {pipeline_mode = #tpu.pipeline_mode<synchronous>, transform_indices = @transform_3, window_bounds = array<i64: 1, 128>}, {transform_indices = @transform_4, window_bounds = array<i64: 128, 1>}, {pipeline_mode = #tpu.pipeline_mode<synchronous>, transform_indices = @transform_5, window_bounds = array<i64: 1, 128>}, {transform_indices = @transform_6, window_bounds = array<i64: 128, 1>}]} {
    %c0_i32 = arith.constant 0 : i32
    %0 = arith.cmpi eq, %arg1, %c0_i32 : i32
    %1 = arith.extui %0 : i1 to i32
    %c0_i32_0 = arith.constant 0 : i32
    %2 = arith.cmpi ne, %1, %c0_i32_0 : i32
    scf.if %2 {
      %cst_19 = arith.constant 0.000000e+00 : f32
      %44 = vector.broadcast %cst_19 : f32 to vector<128x128xf32>
      %c0_20 = arith.constant 0 : index
      %c0_21 = arith.constant 0 : index
      %45 = vector.load %arg9[%c0_20, %c0_21] : memref<128x128xf32, #tpu.memory_space<vmem>>, vector<128x128xf32>
      tpu.vector_store %arg9[%c0_20, %c0_21], %44 {strides = array<i32>} : memref<128x128xf32, #tpu.memory_space<vmem>>, vector<128x128xf32>,
    } else {
    }
    %c128_i32 = arith.constant 128 : i32
    %3 = arith.muli %arg1, %c128_i32 : i32
    %4 = tpu.assume_multiple %3, 128 : i32
    %5 = arith.index_cast %4 : i32 to index
    %c0 = arith.constant 0 : index
    %6 = vector.load %arg3[%5, %c0] : memref<128x128xbf16, #tpu.memory_space<vmem>>, vector<128x128xbf16>
    %c0_1 = arith.constant 0 : index
    %c0_2 = arith.constant 0 : index
    %7 = vector.load %arg2[%c0_1, %c0_2] : memref<128x128xbf16, #tpu.memory_space<vmem>>, vector<128x128xbf16>
    %cst = arith.constant dense<0.000000e+00> : vector<128x128xf32>
    %8 = tpu.matmul %7, %6, %cst {dimension_numbers = #tpu.dot_dimension_numbers<[1], [1], [0], [0], [0, 0, 1, 0], [], []>} : vector<128x128xbf16>, vector<128x128xbf16>, vector<128x128xf32> -> vector<128x128xf32>
    %c0_3 = arith.constant 0 : index
    %9 = arith.index_cast %4 : i32 to index
    %10 = vector.load %arg5[%c0_3, %9] : memref<1x128xf32, #tpu.memory_space<vmem>>, vector<1x128xf32>
    %c0_4 = arith.constant 0 : index
    %11 = arith.index_cast %4 : i32 to index
    %12 = vector.load %arg7[%c0_4, %11] : memref<1x128xi32, #tpu.memory_space<vmem>>, vector<1x128xi32>
    %c0_5 = arith.constant 0 : index
    %c0_6 = arith.constant 0 : index
    %13 = vector.load %arg4[%c0_5, %c0_6] : memref<128x1xf32, #tpu.memory_space<vmem>>, vector<128x1xf32>
    %14 = vector.broadcast %13 : vector<128x1xf32> to vector<128x128xf32>
    %15 = vector.broadcast %10 : vector<1x128xf32> to vector<128x128xf32>
    %16 = arith.addf %14, %15 : vector<128x128xf32>
    %cst_7 = arith.constant 2.000000e+00 : f32
    %17 = vector.broadcast %cst_7 : f32 to vector<128x128xf32>
    %18 = arith.mulf %17, %8 : vector<128x128xf32>
    %19 = arith.subf %16, %18 : vector<128x128xf32>
    %cst_8 = arith.constant 0.000000e+00 : f32
    %20 = vector.broadcast %cst_8 : f32 to vector<128x128xf32>
    %21 = arith.maximumf %19, %20 : vector<128x128xf32>
    %22 = math.sqrt %21 : vector<128x128xf32>
    %23 = tpu.iota {dimensions = array<i32: 1>} : vector<128x128xi32>
    %24 = vector.broadcast %4 : i32 to vector<128x128xi32>
    %25 = arith.addi %24, %23 : vector<128x128xi32>
    %c0_9 = arith.constant 0 : index
    %c0_10 = arith.constant 0 : index
    %26 = vector.load %arg6[%c0_9, %c0_10] : memref<128x1xi32, #tpu.memory_space<vmem>>, vector<128x1xi32>
    %27 = vector.broadcast %12 : vector<1x128xi32> to vector<128x128xi32>
    %28 = vector.broadcast %26 : vector<128x1xi32> to vector<128x128xi32>
    %29 = arith.cmpi ne, %27, %28 : vector<128x128xi32>
    %c8_i32 = arith.constant 8 : i32
    %30 = vector.broadcast %c8_i32 : i32 to vector<128x128xi32>
    %31 = arith.cmpi slt, %25, %30 : vector<128x128xi32>
    %32 = arith.andi %29, %31 : vector<128x128xi1>
    %cst_11 = arith.constant 1.000000e+00 : f32
    %33 = vector.broadcast %cst_11 : f32 to vector<128x128xf32>
    %34 = arith.subf %33, %22 : vector<128x128xf32>
    %35 = math.exp %34 : vector<128x128xf32>
    %cst_12 = arith.constant 0.000000e+00 : f32
    %36 = vector.broadcast %cst_12 : f32 to vector<128x128xf32>
    %37 = arith.select %32, %35, %36 : vector<128x128xi1>, vector<128x128xf32>
    %c0_13 = arith.constant 0 : index
    %c0_14 = arith.constant 0 : index
    %38 = vector.load %arg9[%c0_13, %c0_14] : memref<128x128xf32, #tpu.memory_space<vmem>>, vector<128x128xf32>
    %39 = arith.addf %38, %37 : vector<128x128xf32>
    %c0_15 = arith.constant 0 : index
    %c0_16 = arith.constant 0 : index
    %40 = vector.load %arg9[%c0_15, %c0_16] : memref<128x128xf32, #tpu.memory_space<vmem>>, vector<128x128xf32>
    tpu.vector_store %arg9[%c0_15, %c0_16], %39 {strides = array<i32>} : memref<128x128xf32, #tpu.memory_space<vmem>>, vector<128x128xf32>,
    %c0_i32_17 = arith.constant 0 : i32
    %41 = arith.cmpi eq, %arg1, %c0_i32_17 : i32
    %42 = arith.extui %41 : i1 to i32
    %c0_i32_18 = arith.constant 0 : i32
    %43 = arith.cmpi ne, %42, %c0_i32_18 : i32
    scf.if %43 {
      %c0_19 = arith.constant 0 : index
      %c0_20 = arith.constant 0 : index
      %44 = vector.load %arg9[%c0_19, %c0_20] : memref<128x128xf32, #tpu.memory_space<vmem>>, vector<128x128xf32>
      %cst_21 = arith.constant dense<0.000000e+00> : vector<128xf32>
      %45 = vector.multi_reduction <add>, %44, %cst_21 [1] : vector<128x128xf32> to vector<128xf32>
      %46 = vector.shape_cast %45 : vector<128xf32> to vector<128x1xf32>
      %c0_22 = arith.constant 0 : index
      %c0_23 = arith.constant 0 : index
      %47 = vector.load %arg8[%c0_22, %c0_23] : memref<128x1xf32, #tpu.memory_space<vmem>>, vector<128x1xf32>
      tpu.vector_store %arg8[%c0_22, %c0_23], %46 {strides = array<i32>} : memref<128x1xf32, #tpu.memory_space<vmem>>, vector<128x1xf32>,
    } else {
    }
    return
  }
  func.func @transform_0(%arg0: i32, %arg1: i32) -> (i32, i32) {
    %c0_i32 = arith.constant 0 : i32
    %c0_i32_0 = arith.constant 0 : i32
    return %arg0, %c0_i32 : i32, i32
  }
  func.func @transform_1(%arg0: i32, %arg1: i32) -> (i32, i32) {
    %c0_i32 = arith.constant 0 : i32
    %c0_i32_0 = arith.constant 0 : i32
    %c0_i32_1 = arith.constant 0 : i32
    return %c0_i32, %c0_i32_0 : i32, i32
  }
  func.func @transform_2(%arg0: i32, %arg1: i32) -> (i32, i32) {
    %c0_i32 = arith.constant 0 : i32
    %c0_i32_0 = arith.constant 0 : i32
    return %arg0, %c0_i32 : i32, i32
  }
  func.func @transform_3(%arg0: i32, %arg1: i32) -> (i32, i32) {
    %c0_i32 = arith.constant 0 : i32
    %c0_i32_0 = arith.constant 0 : i32
    %c0_i32_1 = arith.constant 0 : i32
    return %c0_i32, %c0_i32_0 : i32, i32
  }
  func.func @transform_4(%arg0: i32, %arg1: i32) -> (i32, i32) {
    %c0_i32 = arith.constant 0 : i32
    %c0_i32_0 = arith.constant 0 : i32
    return %arg0, %c0_i32 : i32, i32
  }
  func.func @transform_5(%arg0: i32, %arg1: i32) -> (i32, i32) {
    %c0_i32 = arith.constant 0 : i32
    %c0_i32_0 = arith.constant 0 : i32
    %c0_i32_1 = arith.constant 0 : i32
    return %c0_i32, %c0_i32_0 : i32, i32
  }
  func.func @transform_6(%arg0: i32, %arg1: i32) -> (i32, i32) {
    %c0_i32 = arith.constant 0 : i32
    %c0_i32_0 = arith.constant 0 : i32
    return %arg0, %c0_i32 : i32, i32
  }
}

</mosaic_0001>

<bundles_post_ra>
// kernel: tpu_custom_call.1
= control target key start
LH: loop header
LB: loop body
LE: loop exit
PB: predicated region body
PF: predicated region fallthrough
CT: control target
= control target key end

     0   :  { %v1016_v1 = vmov 0   ;;  %s1579_s1 = inlined_call_operand.vmem [shape: bf16[128,128], index: 1, kind: input, shape index: {}]   ;;  %s1580_s0 = inlined_call_operand.vmem [shape: bf16[128,128], index: 0, kind: input, shape index: {}]   ;;  %s1581_s2 = inlined_call_operand.vmem [shape: f32[128,1], index: 2, kind: input, shape index: {}]   ;;  %s1582_s4 = inlined_call_operand.vmem [shape: s32[128,1], index: 4, kind: input, shape index: {}]   ;;  %s1583_s3 = inlined_call_operand.vmem [shape: f32[1,128], index: 3, kind: input, shape index: {}]   ;;  %s1584_s5 = inlined_call_operand.vmem [shape: s32[1,128], index: 5, kind: input, shape index: {}]   ;;  %s1585_s6 = inlined_call_operand.vmem [shape: f32[128,1], index: 6, kind: output, shape index: {}]  }
   0x1   :  { %v936_v0 = vld [vmem:[%s1579_s1] sm:$0xff]   ;;  %934 = vset.pattern.permute.xlu0 %v1016_v1  ;;  %935 = vset.pattern.permute.xlu1 %v1016_v1  ;;  %v937_v2 = vld [vmem:[%s1579_s1 + $0x8] sm:$0xff]   ;;  %v938_v3 = vld [vmem:[%s1579_s1 + $0x10] sm:$0xff]   ;;  %v558_v1 = vlaneseq }
   0x2   :  { %885 = vmatprep.subr.bf16.mxu0 %v936_v0  ;;  %917 = vmatprep.subr.bf16.mxu1 %v936_v0  ;;  %v944_v4 = vld [vmem:[%s1580_s0] sm:$0xff]   ;;  %v939_v6 = vld [vmem:[%s1579_s1 + $0x18] sm:$0xff]   ;;  %v282_v8 = vld [vmem:[%s1581_s2 + $0x10] sm:$0xff] }
   0x3   :  { %886 = vmatpush3.bf16.xpose.msra.mxu0 %v936_v0  ;;  %925 = vmatpush3.bf16.xpose.msra.mxu1 %v936_v0  ;;  %v945_v5 = vld [vmem:[%s1580_s0 + $0x20] sm:$0xff]   ;;  %v281_v9 = vld [vmem:[%s1581_s2 + $0x8] sm:$0xff]  ;;  %v283_v10 = vld [vmem:[%s1581_s2 + $0x18] sm:$0xff] }
   0x4   :  { %887 = vmatprep.subr.bf16.mxu0 %v937_v2  ;;  %918 = vmatprep.subr.bf16.mxu1 %v937_v2  ;;  %v280_v7 = vld [vmem:[%s1581_s2] sm:$0xff]  ;;  %v285_v12 = vld [vmem:[%s1581_s2 + $0x28] sm:$0xff]  ;;  %v286_v14 = vld [vmem:[%s1581_s2 + $0x30] sm:$0xff] }
   0x5   :  { %901 = vmatprep.mubr.bf16.mxu0 %v944_v4  ;;  %909 = vmatprep.mubr.bf16.mxu1 %v945_v5  ;;  %v284_v11 = vld [vmem:[%s1581_s2 + $0x20] sm:$0xff]  ;;  %v287_v15 = vld [vmem:[%s1581_s2 + $0x38] sm:$0xff]  ;;  %v289_v17 = vld [vmem:[%s1581_s2 + $0x48] sm:$0xff]  ;;  %v1201_v4 = vand.u32 127, %v558_v1 }
   0x6   :  { %298 = vperm.xlu0 %934, %v280_v7   ;;  %308 = vperm.xlu1 %935, %v282_v8   ;;  %v940_v13 = vld [vmem:[%s1579_s1 + $0x20] sm:$0xff]   ;;  %v941_v18 = vld [vmem:[%s1579_s1 + $0x28] sm:$0xff]   ;;  %v290_v19 = vld [vmem:[%s1581_s2 + $0x50] sm:$0xff] }
   0x7   :  { %v288_v16 = vld [vmem:[%s1581_s2 + $0x40] sm:$0xff]  ;;  %v291_v20 = vld [vmem:[%s1581_s2 + $0x58] sm:$0xff]  ;;  %v293_v22 = vld [vmem:[%s1581_s2 + $0x68] sm:$0xff]  ;;  %vm646_vm10 = vcmp.lt.s32.totalorder %v1201_v4, 8 }
   0x8   :  { %v292_v21 = vld [vmem:[%s1581_s2 + $0x60] sm:$0xff]  ;;  %v942_v23 = vld [vmem:[%s1579_s1 + $0x30] sm:$0xff]   ;;  %v295_v25 = vld [vmem:[%s1581_s2 + $0x78] sm:$0xff] }
   0x9   :  { %v294_v24 = vld [vmem:[%s1581_s2 + $0x70] sm:$0xff]  ;;  %v562_v26 = vld [vmem:[%s1582_s4] sm:$0xff]  ;;  %v563_v27 = vld [vmem:[%s1582_s4 + $0x8] sm:$0xff] }
   0xa   :  { %303 = vperm.xlu0 %934, %v281_v9   ;;  %313 = vperm.xlu1 %935, %v283_v10   ;;  %v943_v28 = vld [vmem:[%s1579_s1 + $0x38] sm:$0xff]   ;;  %v564_v29 = vld [vmem:[%s1582_s4 + $0x10] sm:$0xff]  ;;  %v566_v31 = vld [vmem:[%s1582_s4 + $0x20] sm:$0xff] }
   0xb   :  { %888 = vmatpush3.bf16.xpose.msra.mxu0 %v937_v2  ;;  %926 = vmatpush3.bf16.xpose.msra.mxu1 %v937_v2  ;;  %v565_v30 = vld [vmem:[%s1582_s4 + $0x18] sm:$0xff]  ;;  %v567_v32 = vld [vmem:[%s1582_s4 + $0x28] sm:$0xff]  ;;  %v568_v33 = vld [vmem:[%s1582_s4 + $0x30] sm:$0xff] }
   0xc   :  { %889 = vmatprep.subr.bf16.mxu0 %v938_v3  ;;  %919 = vmatprep.subr.bf16.mxu1 %v938_v3  ;;  %v569_v34 = vld [vmem:[%s1582_s4 + $0x38] sm:$0xff]  ;;  %v946_v35 = vld [vmem:[%s1580_s0 + $0x8] sm:$0xff]   ;;  %v570_v37 = vld [vmem:[%s1582_s4 + $0x40] sm:$0xff] }
   0xd   :  { %v947_v36 = vld [vmem:[%s1580_s0 + $0x28] sm:$0xff]   ;;  %v948_v39 = vld [vmem:[%s1580_s0 + $0x10] sm:$0xff]   ;;  %v573_v42 = vld [vmem:[%s1582_s4 + $0x58] sm:$0xff] }
   0xe   :  { %318 = vperm.xlu0 %934, %v284_v11   ;;  %323 = vperm.xlu1 %935, %v285_v12   ;;  %v571_v38 = vld [vmem:[%s1582_s4 + $0x48] sm:$0xff]  ;;  %v949_v40 = vld [vmem:[%s1580_s0 + $0x30] sm:$0xff]   ;;  %v950_v43 = vld [vmem:[%s1580_s0 + $0x18] sm:$0xff]  }
   0xf   :  { %v572_v41 = vld [vmem:[%s1582_s4 + $0x50] sm:$0xff]  ;;  %v951_v44 = vld [vmem:[%s1580_s0 + $0x38] sm:$0xff]   ;;  %v574_v45 = vld [vmem:[%s1582_s4 + $0x60] sm:$0xff] }
  0x10   :  { %v575_v46 = vld [vmem:[%s1582_s4 + $0x68] sm:$0xff]  ;;  %v576_v47 = vld [vmem:[%s1582_s4 + $0x70] sm:$0xff]  ;;  %v577_v48 = vld [vmem:[%s1582_s4 + $0x78] sm:$0xff] }
  0x11   :  { %v867_v2 = vld [vmem:[%s1583_s3] ss:$0 sm:$0xff] }
  0x12   :  { %328 = vperm.xlu0 %934, %v286_v14   ;;  %333 = vperm.xlu1 %935, %v287_v15  }
  0x13   :  { %890 = vmatpush3.bf16.xpose.msra.mxu0 %v938_v3  ;;  %927 = vmatpush3.bf16.xpose.msra.mxu1 %v938_v3 }
  0x14   :  { %891 = vmatprep.subr.bf16.mxu0 %v939_v6  ;;  %920 = vmatprep.subr.bf16.mxu1 %v939_v6 }
  0x16   :  { %338 = vperm.xlu0 %934, %v288_v16   ;;  %343 = vperm.xlu1 %935, %v289_v17  }
  0x1a   :  { %348 = vperm.xlu0 %934, %v290_v19   ;;  %353 = vperm.xlu1 %935, %v291_v20  }
  0x1b   :  { %892 = vmatpush3.bf16.xpose.msra.mxu0 %v939_v6  ;;  %928 = vmatpush3.bf16.xpose.msra.mxu1 %v939_v6 }
  0x1c   :  { %893 = vmatprep.subr.bf16.mxu0 %v940_v13  ;;  %921 = vmatprep.subr.bf16.mxu1 %v940_v13 }
  0x1e   :  { %358 = vperm.xlu0 %934, %v292_v21   ;;  %363 = vperm.xlu1 %935, %v293_v22  }
  0x22   :  { %368 = vperm.xlu0 %934, %v294_v24   ;;  %373 = vperm.xlu1 %935, %v295_v25  }
  0x23   :  { %894 = vmatpush3.bf16.xpose.msra.mxu0 %v940_v13  ;;  %929 = vmatpush3.bf16.xpose.msra.mxu1 %v940_v13 }
  0x24   :  { %895 = vmatprep.subr.bf16.mxu0 %v941_v18  ;;  %922 = vmatprep.subr.bf16.mxu1 %v941_v18 }
  0x26   :  { %583 = vperm.xlu0 %934, %v562_v26   ;;  %586 = vperm.xlu1 %935, %v563_v27  }
  0x2a   :  { %589 = vperm.xlu0 %934, %v564_v29   ;;  %592 = vperm.xlu1 %935, %v565_v30  }
  0x2b   :  { %896 = vmatpush3.bf16.xpose.msra.mxu0 %v941_v18  ;;  %930 = vmatpush3.bf16.xpose.msra.mxu1 %v941_v18 }
  0x2c   :  { %897 = vmatprep.subr.bf16.mxu0 %v942_v23  ;;  %923 = vmatprep.subr.bf16.mxu1 %v942_v23 }
  0x2e   :  { %595 = vperm.xlu0 %934, %v566_v31   ;;  %598 = vperm.xlu1 %935, %v567_v32  }
  0x32   :  { %601 = vperm.xlu0 %934, %v568_v33   ;;  %604 = vperm.xlu1 %935, %v569_v34  }
  0x33   :  { %898 = vmatpush3.bf16.xpose.msra.mxu0 %v942_v23  ;;  %931 = vmatpush3.bf16.xpose.msra.mxu1 %v942_v23 }
  0x34   :  { %899 = vmatprep.subr.bf16.mxu0 %v943_v28  ;;  %924 = vmatprep.subr.bf16.mxu1 %v943_v28 }
  0x36   :  { %607 = vperm.xlu0 %934, %v570_v37   ;;  %610 = vperm.xlu1 %935, %v571_v38  }
  0x3a   :  { %613 = vperm.xlu0 %934, %v572_v41   ;;  %616 = vperm.xlu1 %935, %v573_v42  }
  0x3b   :  { %900 = vmatpush3.bf16.xpose.msra.mxu0 %v943_v28  ;;  %932 = vmatpush3.bf16.xpose.msra.mxu1 %v943_v28 }
  0x3e   :  { %619 = vperm.xlu0 %934, %v574_v45   ;;  %622 = vperm.xlu1 %935, %v575_v46  }
  0x42   :  { %902 = vmatmul.mubr.bf16.vlgmr.msra.gmra.mrb[0].mxu0 %v946_v35  ;;  %910 = vmatmul.mubr.bf16.vlgmr.msra.gmra.mrb[0].mxu1 %v947_v36 }
  0x43   :  { %905 = vmatprep.mubr.bf16.mxu0 %v948_v39  ;;  %913 = vmatprep.mubr.bf16.mxu1 %v949_v40 }
  0x44   :  { %625 = vperm.xlu0 %934, %v576_v47   ;;  %628 = vperm.xlu1 %935, %v577_v48  }
  0x4a   :  { %906 = vmatmul.mubr.bf16.gmra.mrb[4].mxu0 %v950_v43  ;;  %914 = vmatmul.mubr.bf16.gmra.mrb[4].mxu1 %v951_v44 }
  0x85   :  { %v299_v49 = vpop.permute.xlu0 %298  ;;  %v309_v51 = vpop.permute.xlu1 %308 }
  0x86   :  { %v382_v3 = vadd.f32 %v867_v2, %v299_v49  ;;  %v384_v5 = vadd.f32 %v867_v2, %v309_v51 }
  0x89   :  { %v304_v50 = vpop.permute.xlu0 %303  ;;  %v314_v53 = vpop.permute.xlu1 %313 }
  0x8a   :  { %v383_v6 = vadd.f32 %v867_v2, %v304_v50  ;;  %v385_v7 = vadd.f32 %v867_v2, %v314_v53 }
  0x8d   :  { %v319_v52 = vpop.permute.xlu0 %318  ;;  %v324_v55 = vpop.permute.xlu1 %323 }
  0x8e   :  { %v1203_v8 = vadd.f32 %v867_v2, %v319_v52  ;;  %v1207_v11 = vadd.f32 %v867_v2, %v324_v55 }
  0x91   :  { %v329_v54 = vpop.permute.xlu0 %328  ;;  %v334_v57 = vpop.permute.xlu1 %333 }
  0x92   :  { %v1209_v12 = vadd.f32 %v867_v2, %v329_v54  ;;  %v1211_v13 = vadd.f32 %v867_v2, %v334_v57 }
  0x95   :  { %v339_v56 = vpop.permute.xlu0 %338  ;;  %v344_v59 = vpop.permute.xlu1 %343 }
  0x96   :  { %v390_v14 = vadd.f32 %v867_v2, %v339_v56  ;;  %v391_v17 = vadd.f32 %v867_v2, %v344_v59 }
  0x99   :  { %v349_v58 = vpop.permute.xlu0 %348  ;;  %v354_v61 = vpop.permute.xlu1 %353 }
  0x9a   :  { %v392_v18 = vadd.f32 %v867_v2, %v349_v58  ;;  %v393_v23 = vadd.f32 %v867_v2, %v354_v61 }
  0x9d   :  { %v359_v60 = vpop.permute.xlu0 %358  ;;  %v364_v63 = vpop.permute.xlu1 %363 }
  0x9e   :  { %v1213_v24 = vadd.f32 %v867_v2, %v359_v60  ;;  %v1225_v48 = vadd.f32 %v867_v2, %v364_v63 }
  0xa1   :  { %v369_v62 = vpop.permute.xlu0 %368  ;;  %v374_v9 = vpop.permute.xlu1 %373 }
  0xa2   :  { %v396_v49 = vadd.f32 %v867_v2, %v369_v62  ;;  %v397_v52 = vadd.f32 %v867_v2, %v374_v9 }
  0xa5   :  { %v1196_v0 = vpop.permute.xlu0 %583  ;;  %v1219_v43 = vpop.permute.xlu1 %586 }
  0xa9   :  { %v1205_v10 = vpop.permute.xlu0 %589 }
  0xad   :  { %v1227_v50 = vpop.permute.xlu0 %595 }
 0x115   :  { %v903_v15 = vpop.f32.mrb[0].mxu0  ;;  %v911_v16 = vpop.f32.mrb[0].mxu1 }
 0x116   :  { %v400_v19 = vmul.f32 2.0, %v903_v15  ;;  %v408_v20 = vmul.f32 2.0, %v911_v16  ;;  %v211_v21 = vpop.f32.mrb[1].mxu0  ;;  %v243_v22 = vpop.f32.mrb[1].mxu1 }
 0x117   :  { %v398_v25 = vmul.f32 2.0, %v211_v21  ;;  %v406_v26 = vmul.f32 2.0, %v243_v22  ;;  %v904_v27 = vpop.f32.mrb[2].mxu0  ;;  %v912_v28 = vpop.f32.mrb[2].mxu1 }
 0x118   :  { %v416_v29 = vsub.f32 %v384_v5, %v400_v19  ;;  %v424_v30 = vsub.f32 %v392_v18, %v408_v20  ;;  %v401_v31 = vmul.f32 2.0, %v904_v27  ;;  %v409_v32 = vmul.f32 2.0, %v912_v28  ;;  %v214_v33 = vpop.f32.mrb[3].mxu0  ;;  %v246_v34 = vpop.f32.mrb[3].mxu1 }
 0x119   :  { %v414_v35 = vsub.f32 %v382_v3, %v398_v25  ;;  %v422_v36 = vsub.f32 %v390_v14, %v406_v26  ;;  %v399_v37 = vmul.f32 2.0, %v214_v33  ;;  %v407_v38 = vmul.f32 2.0, %v246_v34  ;;  %v1245_v15 = vpop.permute.xlu1 %592  ;;  %v1251_v19 = vpop.permute.xlu0 %601 }
 0x11a   :  { %v1215_v39 = vmax.f32 %v416_v29, 0.0  ;;  %v1217_v40 = vmax.f32 %v424_v30, 0.0  ;;  %v417_v41 = vsub.f32 %v385_v7, %v401_v31  ;;  %v425_v42 = vsub.f32 %v393_v23, %v409_v32 }
 0x11b   :  { %v1221_v44 = vmax.f32 %v414_v35, 0.0  ;;  %v1223_v45 = vmax.f32 %v422_v36, 0.0  ;;  %v415_v46 = vsub.f32 %v383_v6, %v399_v37  ;;  %v423_v47 = vsub.f32 %v391_v17, %v407_v38 }
 0x11c   :  { %952 = vrsqrt.f32 %v1215_v39  ;;  %v1230_v51 = vmax.f32 %v417_v41, 0.0  ;;  %v1233_v53 = vmax.f32 %v425_v42, 0.0  ;;  %v521_v3 = vand.u32 2147483648, %v1217_v40 }
 0x11d   :  { %954 = vrsqrt.f32 %v1217_v40  ;;  %v1235_v54 = vmax.f32 %v415_v46, 0.0  ;;  %v907_v55 = vpop.f32.mrb[4].mxu0  ;;  %v915_v56 = vpop.f32.mrb[4].mxu1  ;;  %v1238_v57 = vmax.f32 %v423_v47, 0.0  ;;  %vm462_vm0 = vcmp.eq.f32.partialorder %v1215_v39, inf }
 0x11e   :  { %956 = vrsqrt.f32 %v1221_v44  ;;  %v404_v58 = vmul.f32 2.0, %v907_v55  ;;  %v412_v59 = vmul.f32 2.0, %v915_v56  ;;  %v227_v60 = vpop.f32.mrb[5].mxu0  ;;  %v259_v61 = vpop.f32.mrb[5].mxu1  ;;  %vm518_vm1 = vcmp.eq.f32.partialorder %v1217_v40, inf }
 0x11f   :  { %958 = vrsqrt.f32 %v1223_v45  ;;  %v402_v62 = vmul.f32 2.0, %v227_v60  ;;  %v410_v63 = vmul.f32 2.0, %v259_v61  ;;  %v908_v1 = vpop.f32.mrb[6].mxu0  ;;  %v916_v2 = vpop.f32.mrb[6].mxu1  ;;  %vm520_vm2 = vcmp.eq.f32.partialorder %v1217_v40, 0.0 }
 0x120   :  { %960 = vrsqrt.f32 %v1230_v51  ;;  %v420_v5 = vsub.f32 %v1209_v12, %v404_v58  ;;  %v428_v6 = vsub.f32 %v396_v49, %v412_v59  ;;  %v405_v7 = vmul.f32 2.0, %v908_v1  ;;  %v230_v9 = vpop.f32.mrb[7].mxu0  ;;  %v262_v14 = vpop.f32.mrb[7].mxu1  ;;  %v1307_v56 = vld [vmem:[%s1584_s5] ss:$0 sm:$0xff] }
 0x121   :  { %962 = vrsqrt.f32 %v1233_v53  ;;  %v418_v16 = vsub.f32 %v1203_v8, %v402_v62  ;;  %v426_v17 = vsub.f32 %v1213_v24, %v410_v63  ;;  %v413_v18 = vmul.f32 2.0, %v916_v2  ;;  %v1277_v32 = vpop.permute.xlu1 %598  ;;  %v1283_v36 = vpop.permute.xlu0 %607 }
 0x122   :  { %964 = vrsqrt.f32 %v1235_v54  ;;  %v1254_v12 = vmax.f32 %v420_v5, 0.0  ;;  %v1256_v20 = vmax.f32 %v428_v6, 0.0  ;;  %v421_v21 = vsub.f32 %v1211_v13, %v405_v7 }
 0x123   :  { %966 = vrsqrt.f32 %v1238_v57  ;;  %v1261_v8 = vmax.f32 %v418_v16, 0.0  ;;  %v1263_v22 = vmax.f32 %v426_v17, 0.0  ;;  %v429_v23 = vsub.f32 %v397_v52, %v413_v18 }
 0x124   :  { %968 = vrsqrt.f32 %v1254_v12  ;;  %v1266_v24 = vmax.f32 %v421_v21, 0.0  ;;  %v403_v25 = vmul.f32 2.0, %v230_v9  ;;  %v411_v26 = vmul.f32 2.0, %v262_v14 }
 0x125   :  { %970 = vrsqrt.f32 %v1256_v20  ;;  %v1269_v27 = vmax.f32 %v429_v23, 0.0  ;;  %vm464_vm3 = vcmp.eq.f32.partialorder %v1215_v39, 0.0  ;;  %v465_v13 = vand.u32 2147483648, %v1215_v39  ;;  %v1320_v2 = vpop.permute.xlu1 %604  ;;  %v1328_v7 = vpop.permute.xlu0 %613 }
 0x126   :  { %v953_v28 = vpop.eup %952  ;;  %972 = vrsqrt.f32 %v1261_v8  ;;  %v419_v29 = vsub.f32 %v1207_v11, %v403_v25  ;;  %v427_v30 = vsub.f32 %v1225_v48, %v411_v26  ;;  %vm504_vm4 = vcmp.eq.f32.partialorder %v1223_v45, inf }
 0x127   :  { %v955_v31 = vpop.eup %954  ;;  %974 = vrsqrt.f32 %v1263_v22  ;;  %v461_v33 = vmul.f32 %v953_v28, %v1215_v39  ;;  %vm506_vm5 = vcmp.eq.f32.partialorder %v1223_v45, 0.0  ;;  %v507_v34 = vand.u32 2147483648, %v1223_v45 }
 0x128   :  { %v957_v35 = vpop.eup %956  ;;  %976 = vrsqrt.f32 %v1266_v24  ;;  %v1286_v11 = vmax.f32 %v419_v29, 0.0  ;;  %v1288_v37 = vmax.f32 %v427_v30, 0.0  ;;  %v517_v38 = vmul.f32 %v955_v31, %v1217_v40 }
 0x129   :  { %v959_v41 = vpop.eup %958  ;;  %978 = vrsqrt.f32 %v1269_v27  ;;  %v463_v42 = vsel %vm462_vm0, %v1215_v39, %v461_v33  ;;  %v447_v46 = vmul.f32 %v957_v35, %v1221_v44  ;;  %vm448_vm6 = vcmp.eq.f32.partialorder %v1221_v44, inf  ;;  %v1354_v35 = vpop.permute.xlu1 %610 }
 0x12a   :  { %v961_v47 = vpop.eup %960  ;;  %980 = vrsqrt.f32 %v1286_v11  ;;  %v519_v48 = vsel %vm518_vm1, %v1217_v40, %v517_v38  ;;  %v466_v49 = vsel %vm464_vm3, %v465_v13, %v463_v42  ;;  %v503_v52 = vmul.f32 %v959_v41, %v1223_v45 }
 0x12b   :  { %v963_v55 = vpop.eup %962  ;;  %982 = vrsqrt.f32 %v1288_v37  ;;  %v522_v58 = vsel %vm520_vm2, %v521_v3, %v519_v48  ;;  %v665_v59 = vsub.f32 1.0, %v466_v49  ;;  %v449_v60 = vsel %vm448_vm6, %v1221_v44, %v447_v46 }
 0x12c   :  { %v965_v39 = vpop.eup %964  ;;  %v673_v61 = vsub.f32 1.0, %v522_v58  ;;  %v505_v62 = vsel %vm504_vm4, %v1223_v45, %v503_v52  ;;  %vm450_vm7 = vcmp.eq.f32.partialorder %v1221_v44, 0.0  ;;  %v451_v63 = vand.u32 2147483648, %v1221_v44 }
 0x12d   :  { %v967_v1 = vpop.eup %966  ;;  %v683_v5 = vmul.f32 1.442695, %v665_v59  ;;  %v508_v40 = vsel %vm506_vm5, %v507_v34, %v505_v62  ;;  %v468_v3 = vmul.f32 %v961_v47, %v1230_v51  ;;  %vm469_vm8 = vcmp.eq.f32.partialorder %v1230_v51, inf }
 0x12e   :  { %v969_v6 = vpop.eup %968  ;;  %vm632_vm9 = vcmp.ne.s32.totalorder %v1307_v56, %v1205_v10  ;;  %v699_v44 = vmul.f32 1.442695, %v673_v61  ;;  %v671_v9 = vsub.f32 1.0, %v508_v40  ;;  %v452_v14 = vsel %vm450_vm7, %v451_v63, %v449_v60 }
 0x12f   :  { %vm471_vm11 = vcmp.eq.f32.partialorder %v1230_v51, 0.0  ;;  %v1332_v16 = vpop.eup %970  ;;  %vm640_vm12 = vcmp.ne.s32.totalorder %v1307_v56, %v1328_v7  ;;  %984 = vpow2.f32 %v683_v5  ;;  %v663_v45 = vsub.f32 1.0, %v452_v14  ;;  %v1378_v5 = vpop.permute.xlu1 %616 }
 0x130   :  { %v470_v17 = vsel %vm469_vm8, %v1230_v51, %v468_v3  ;;  %v472_v18 = vand.u32 2147483648, %v1230_v51  ;;  %v973_v21 = vpop.eup %972  ;;  %986 = vpow2.f32 %v699_v44  ;;  %v695_v23 = vmul.f32 1.442695, %v671_v9 }
 0x131   :  { %v454_v25 = vmul.f32 %v965_v39, %v1235_v54  ;;  %vm455_vm13 = vcmp.eq.f32.partialorder %v1235_v54, inf  ;;  %v1340_v26 = vpop.eup %974  ;;  %vm638_vm14 = vcmp.ne.s32.totalorder %v1307_v56, %v1283_v36  ;;  %v679_v13 = vmul.f32 1.442695, %v663_v45 }
 0x132   :  { %v473_v28 = vsel %vm471_vm11, %v472_v18, %v470_v17  ;;  %vm457_vm15 = vcmp.eq.f32.partialorder %v1235_v54, 0.0  ;;  %v458_v29 = vand.u32 2147483648, %v1235_v54  ;;  %v1346_v30 = vpop.eup %976  ;;  %vm630_vm0 = vcmp.ne.s32.totalorder %v1307_v56, %v1196_v0  ;;  %vm649_vm11 = vmand %vm632_vm9, %vm646_vm10 }
 0x133   :  { %988 = vpow2.f32 %v695_v23  ;;  %v666_v51 = vsub.f32 1.0, %v473_v28  ;;  %v456_v31 = vsel %vm455_vm13, %v1235_v54, %v454_v25  ;;  %v524_v33 = vmul.f32 %v963_v55, %v1233_v53  ;;  %v1352_v34 = vpop.eup %978 }
 0x134   :  { %990 = vpow2.f32 %v679_v13  ;;  %v459_v38 = vsel %vm457_vm15, %v458_v29, %v456_v31  ;;  %vm525_vm1 = vcmp.eq.f32.partialorder %v1233_v53, inf  ;;  %vm527_vm2 = vcmp.eq.f32.partialorder %v1233_v53, 0.0  ;;  %v1358_v41 = vpop.eup %980 }
 0x135   :  { %v685_v42 = vmul.f32 1.442695, %v666_v51  ;;  %v664_v46 = vsub.f32 1.0, %v459_v38  ;;  %v526_v47 = vsel %vm525_vm1, %v1233_v53, %v524_v33  ;;  %v528_v54 = vand.u32 2147483648, %v1233_v53  ;;  %v1362_v48 = vpop.eup %982  ;;  %vm657_vm1 = vmand %vm640_vm12, %vm646_vm10 }
 0x136   :  { %vm633_vm3 = vcmp.ne.s32.totalorder %v1307_v56, %v1245_v15  ;;  %v489_v49 = vmul.f32 %v969_v6, %v1254_v12  ;;  %vm490_vm4 = vcmp.eq.f32.partialorder %v1254_v12, inf  ;;  %vm492_vm5 = vcmp.eq.f32.partialorder %v1254_v12, 0.0  ;;  %vm1405_vm12 = vmand %vm638_vm14, %vm646_vm10 }
 0x137   :  { %v493_v52 = vand.u32 2147483648, %v1254_v12  ;;  %992 = vpow2.f32 %v685_v42  ;;  %v681_v55 = vmul.f32 1.442695, %v664_v46  ;;  %v529_v58 = vsel %vm527_vm2, %v528_v54, %v526_v47  ;;  %vm647_vm14 = vmand %vm630_vm0, %vm646_vm10 }
 0x138   :  { %v510_v59 = vmul.f32 %v967_v1, %v1238_v57  ;;  %vm631_vm6 = vcmp.ne.s32.totalorder %v1307_v56, %v1219_v43  ;;  %v674_v53 = vsub.f32 1.0, %v529_v58  ;;  %v491_v60 = vsel %vm490_vm4, %v1254_v12, %v489_v49 }
 0x139   :  { %vm511_vm7 = vcmp.eq.f32.partialorder %v1238_v57, inf  ;;  %vm513_vm8 = vcmp.eq.f32.partialorder %v1238_v57, 0.0  ;;  %994 = vpow2.f32 %v681_v55  ;;  %v494_v39 = vsel %vm492_vm5, %v493_v52, %v491_v60  ;;  %v985_v63 = vpop.eup %984 }
 0x13a   :  { %v512_v61 = vsel %vm511_vm7, %v1238_v57, %v510_v59  ;;  %v514_v62 = vand.u32 2147483648, %v1238_v57  ;;  %v701_v12 = vmul.f32 1.442695, %v674_v53  ;;  %v669_v1 = vsub.f32 1.0, %v494_v39  ;;  %v987_v3 = vpop.eup %986 }
 0x13b   :  { %v475_v40 = vmul.f32 %v973_v21, %v1261_v8  ;;  %vm476_vm13 = vcmp.eq.f32.partialorder %v1261_v8, inf  ;;  %vm641_vm15 = vcmp.ne.s32.totalorder %v1307_v56, %v1378_v5  ;;  %v713_v6 = vsel %vm649_vm11, %v985_v63, 0.0  ;;  %vm650_vm11 = vmand %vm633_vm3, %vm646_vm10 }
 0x13c   :  { %v515_v10 = vsel %vm513_vm8, %v514_v62, %v512_v61  ;;  %vm478_vm9 = vcmp.eq.f32.partialorder %v1261_v8, 0.0  ;;  %v479_v44 = vand.u32 2147483648, %v1261_v8  ;;  %v721_v9 = vsel %vm657_vm1, %v987_v3, 0.0  ;;  %798 = vadd.xlane.f32.xlu0 %v713_v6  ;;  %vm648_vm3 = vmand %vm631_vm6, %vm646_vm10  ;;  %v620_v62 = vpop.permute.xlu0 %619 }
 0x13d   :  { %996 = vpow2.f32 %v701_v12  ;;  %v691_v14 = vmul.f32 1.442695, %v669_v1  ;;  %v672_v45 = vsub.f32 1.0, %v515_v10  ;;  %v989_v17 = vpop.eup %988  ;;  %vm636_vm2 = vcmp.ne.s32.totalorder %v1307_v56, %v1251_v19  ;;  %814 = vadd.xlane.f32.xlu1 %v721_v9 }
 0x13e   :  { %v477_v7 = vsel %vm476_vm13, %v1261_v8, %v475_v40  ;;  %v531_v18 = vmul.f32 %v1340_v26, %v1263_v22  ;;  %vm532_vm4 = vcmp.eq.f32.partialorder %v1263_v22, inf  ;;  %vm534_vm5 = vcmp.eq.f32.partialorder %v1263_v22, 0.0  ;;  %v991_v21 = vpop.eup %990 }
 0x13f   :  { %v719_v23 = vsel %vm1405_vm12, %v989_v17, 0.0  ;;  %998 = vpow2.f32 %v691_v14  ;;  %v697_v36 = vmul.f32 1.442695, %v672_v45  ;;  %v480_v25 = vsel %vm478_vm9, %v479_v44, %v477_v7  ;;  %vm658_vm12 = vmand %vm641_vm15, %vm646_vm10 }
 0x140   :  { %vm639_vm7 = vcmp.ne.s32.totalorder %v1307_v56, %v1354_v35  ;;  %v711_v26 = vsel %vm647_vm14, %v991_v21, 0.0  ;;  %v667_v13 = vsub.f32 1.0, %v480_v25  ;;  %v533_v28 = vsel %vm532_vm4, %v1263_v22, %v531_v18  ;;  %vm653_vm15 = vmand %vm636_vm2, %vm646_vm10  ;;  %v626_v17 = vpop.permute.xlu0 %625  ;;  %v623_v18 = vpop.permute.xlu1 %622 }
 0x141   :  { %v535_v29 = vand.u32 2147483648, %v1263_v22  ;;  %794 = vadd.xlane.f32.xlu0 %v711_v26  ;;  %1000 = vpow2.f32 %v697_v36  ;;  %v496_v0 = vmul.f32 %v1346_v30, %v1266_v24  ;;  %vm497_vm0 = vcmp.eq.f32.partialorder %v1266_v24, inf  ;;  %v993_v8 = vpop.eup %992  ;;  %810 = vadd.xlane.f32.xlu1 %v719_v23  ;;  %vm656_vm2 = vmand %vm639_vm7, %vm646_vm10 }
 0x142   :  { %vm499_vm8 = vcmp.eq.f32.partialorder %v1266_v24, 0.0  ;;  %v687_v51 = vmul.f32 1.442695, %v667_v13  ;;  %v500_v33 = vand.u32 2147483648, %v1266_v24  ;;  %v545_v30 = vmul.f32 %v1332_v16, %v1256_v20 }
 0x143   :  { %v536_v31 = vsel %vm534_vm5, %v535_v29, %v533_v28  ;;  %v714_v38 = vsel %vm650_vm11, %v993_v8, 0.0  ;;  %v498_v46 = vsel %vm497_vm0, %v1266_v24, %v496_v0  ;;  %vm546_vm13 = vcmp.eq.f32.partialorder %v1256_v20, inf  ;;  %v995_v47 = vpop.eup %994 }
 0x144   :  { %v675_v42 = vsub.f32 1.0, %v536_v31  ;;  %1002 = vpow2.f32 %v687_v51  ;;  %v501_v15 = vsel %vm499_vm8, %v500_v33, %v498_v46  ;;  %v547_v22 = vsel %vm546_vm13, %v1256_v20, %v545_v30  ;;  %v629_v26 = vpop.permute.xlu1 %628 }
 0x145   :  { %vm548_vm1 = vcmp.eq.f32.partialorder %v1256_v20, 0.0  ;;  %800 = vadd.xlane.f32.xlu0 %v714_v38  ;;  %v712_v16 = vsel %vm648_vm3, %v995_v47, 0.0  ;;  %v670_v49 = vsub.f32 1.0, %v501_v15  ;;  %v549_v24 = vand.u32 2147483648, %v1256_v20 }
 0x146   :  { %v703_v54 = vmul.f32 1.442695, %v675_v42  ;;  %796 = vadd.xlane.f32.xlu1 %v712_v16  ;;  %v482_v52 = vmul.f32 %v1358_v41, %v1286_v11  ;;  %vm483_vm9 = vcmp.eq.f32.partialorder %v1286_v11, inf  ;;  %vm485_vm6 = vcmp.eq.f32.partialorder %v1286_v11, 0.0 }
 0x147   :  { %v486_v43 = vand.u32 2147483648, %v1286_v11  ;;  %v997_v55 = vpop.eup %996  ;;  %v693_v58 = vmul.f32 1.442695, %v670_v49  ;;  %v550_v20 = vsel %vm548_vm1, %v549_v24, %v547_v22  ;;  %v538_v59 = vmul.f32 %v1362_v48, %v1288_v37 }
 0x148   :  { %1004 = vpow2.f32 %v703_v54  ;;  %v722_v41 = vsel %vm658_vm12, %v997_v55, 0.0  ;;  %v677_v53 = vsub.f32 1.0, %v550_v20  ;;  %v484_v60 = vsel %vm483_vm9, %v1286_v11, %v482_v52 }
 0x149   :  { %vm539_vm4 = vcmp.eq.f32.partialorder %v1288_v37, inf  ;;  %v999_v39 = vpop.eup %998  ;;  %vm634_vm5 = vcmp.ne.s32.totalorder %v1307_v56, %v1227_v50  ;;  %816 = vadd.xlane.f32.xlu0 %v722_v41  ;;  %1006 = vpow2.f32 %v693_v58  ;;  %v487_v48 = vsel %vm485_vm6, %v486_v43, %v484_v60 }
 0x14a   :  { %v540_v61 = vsel %vm539_vm4, %v1288_v37, %v538_v59  ;;  %v717_v63 = vsel %vm653_vm15, %v999_v39, 0.0  ;;  %v707_v5 = vmul.f32 1.442695, %v677_v53  ;;  %v668_v12 = vsub.f32 1.0, %v487_v48  ;;  %vm651_vm7 = vmand %vm634_vm5, %vm646_vm10 }
 0x14b   :  { %v542_v1 = vand.u32 2147483648, %v1288_v37  ;;  %v1001_v40 = vpop.eup %1000  ;;  %806 = vadd.xlane.f32.xlu1 %v717_v63  ;;  %vm541_vm14 = vcmp.eq.f32.partialorder %v1288_v37, 0.0  ;;  %v552_v19 = vmul.f32 %v1352_v34, %v1269_v27  ;;  %vm553_vm0 = vcmp.eq.f32.partialorder %v1269_v27, inf }
 0x14c   :  { %v556_v11 = vand.u32 2147483648, %v1269_v27  ;;  %v720_v3 = vsel %vm656_vm2, %v1001_v40, 0.0  ;;  %1008 = vpow2.f32 %v707_v5  ;;  %v689_v6 = vmul.f32 1.442695, %v668_v12 }
 0x14d   :  { %v543_v10 = vsel %vm541_vm14, %v542_v1, %v540_v61  ;;  %812 = vadd.xlane.f32.xlu0 %v720_v3  ;;  %v554_v9 = vsel %vm553_vm0, %v1269_v27, %v552_v19  ;;  %vm555_vm8 = vcmp.eq.f32.partialorder %v1269_v27, 0.0  ;;  %vm642_vm11 = vcmp.ne.s32.totalorder %v1307_v56, %v620_v62 }
 0x14e   :  { %v676_v44 = vsub.f32 1.0, %v543_v10  ;;  %v1003_v35 = vpop.eup %1002  ;;  %1010 = vpow2.f32 %v689_v6  ;;  %v557_v37 = vsel %vm555_vm8, %v556_v11, %v554_v9  ;;  %vm637_vm13 = vcmp.ne.s32.totalorder %v1307_v56, %v1320_v2  ;;  %vm659_vm3 = vmand %vm642_vm11, %vm646_vm10 }
 0x14f   :  { %v715_v34 = vsel %vm651_vm7, %v1003_v35, 0.0  ;;  %v678_v45 = vsub.f32 1.0, %v557_v37  ;;  %vm644_vm1 = vcmp.ne.s32.totalorder %v1307_v56, %v626_v17  ;;  %vm654_vm9 = vmand %vm637_vm13, %vm646_vm10  ;;  %vm635_vm6 = vcmp.ne.s32.totalorder %v1307_v56, %v1277_v32 }
 0x150   :  { %v705_v14 = vmul.f32 1.442695, %v676_v44  ;;  %802 = vadd.xlane.f32.xlu1 %v715_v34  ;;  %vm661_vm12 = vmand %vm644_vm1, %vm646_vm10  ;;  %vm643_vm5 = vcmp.ne.s32.totalorder %v1307_v56, %v623_v18  ;;  %vm645_vm2 = vcmp.ne.s32.totalorder %v1307_v56, %v629_v26  ;;  %vm826_vm0 = vcmask 7168  }
 0x151   :  { %v709_v57 = vmul.f32 1.442695, %v678_v45  ;;  %vm652_vm4 = vmand %vm635_vm6, %vm646_vm10 }
 0x152   :  { %v1005_v27 = vpop.eup %1004  ;;  %1012 = vpow2.f32 %v705_v14  ;;  %vm660_vm15 = vmand %vm643_vm5, %vm646_vm10 }
 0x153   :  { %v1007_v50 = vpop.eup %1006  ;;  %v723_v7 = vsel %vm659_vm3, %v1005_v27, 0.0  ;;  %1014 = vpow2.f32 %v709_v57  ;;  %vm662_vm14 = vmand %vm645_vm2, %vm646_vm10 }
 0x154   :  { %818 = vadd.xlane.f32.xlu1 %v723_v7  ;;  %v718_v21 = vsel %vm654_vm9, %v1007_v50, 0.0 }
 0x155   :  { %808 = vadd.xlane.f32.xlu0 %v718_v21 }
 0x156   :  { %v1009_v2 = vpop.eup %1008 }
 0x157   :  { %v725_v23 = vsel %vm661_vm12, %v1009_v2, 0.0 }
 0x158   :  { %v1011_v36 = vpop.eup %1010  ;;  %822 = vadd.xlane.f32.xlu1 %v725_v23 }
 0x159   :  { %v716_v25 = vsel %vm652_vm4, %v1011_v36, 0.0 }
 0x15a   :  { %804 = vadd.xlane.f32.xlu0 %v716_v25 }
 0x15c   :  { %v1013_v13 = vpop.eup %1012 }
 0x15d   :  { %v724_v32 = vsel %vm660_vm15, %v1013_v13, 0.0  ;;  %v1015_v28 = vpop.eup %1014 }
 0x15e   :  { %820 = vadd.xlane.f32.xlu0 %v724_v32  ;;  %v726_v29 = vsel %vm662_vm14, %v1015_v28, 0.0 }
 0x162   :  { %824 = vadd.xlane.f32.xlu0 %v726_v29 }
 0x1c9   :  { %v799_v0 = vpop.xlane.xlu0 %798 }
 0x1ca   :  { %v815_v8 = vpop.xlane.xlu1 %814  ;;  %829 = vst.msk [vmem:[%s1585_s6 + $0x10] sm:$0xff] %vm826_vm0, %v799_v0 }
 0x1cb   :  { %837 = vst.msk [vmem:[%s1585_s6 + $0x50] sm:$0xff] %vm826_vm0, %v815_v8 }
 0x1ce   :  { %v795_v56 = vpop.xlane.xlu0 %794  ;;  %v811_v51 = vpop.xlane.xlu1 %810 }
 0x1cf   :  { %827 = vst.msk [vmem:[%s1585_s6] sm:$0xff] %vm826_vm0, %v795_v56  ;;  %835 = vst.msk [vmem:[%s1585_s6 + $0x40] sm:$0xff] %vm826_vm0, %v811_v51 }
 0x1d2   :  { %v801_v4 = vpop.xlane.xlu0 %800 }
 0x1d3   :  { %830 = vst.msk [vmem:[%s1585_s6 + $0x18] sm:$0xff] %vm826_vm0, %v801_v4  ;;  %v797_v31 = vpop.xlane.xlu1 %796 }
 0x1d4   :  { %828 = vst.msk [vmem:[%s1585_s6 + $0x8] sm:$0xff] %vm826_vm0, %v797_v31 }
 0x1d6   :  { %v817_v33 = vpop.xlane.xlu0 %816 }
 0x1d7   :  { %838 = vst.msk [vmem:[%s1585_s6 + $0x58] sm:$0xff] %vm826_vm0, %v817_v33 }
 0x1d8   :  { %v807_v30 = vpop.xlane.xlu1 %806 }
 0x1d9   :  { %833 = vst.msk [vmem:[%s1585_s6 + $0x30] sm:$0xff] %vm826_vm0, %v807_v30 }
 0x1da   :  { %v813_v38 = vpop.xlane.xlu0 %812 }
 0x1db   :  { %836 = vst.msk [vmem:[%s1585_s6 + $0x48] sm:$0xff] %vm826_vm0, %v813_v38 }
 0x1dd   :  { %v803_v42 = vpop.xlane.xlu1 %802 }
 0x1de   :  { %831 = vst.msk [vmem:[%s1585_s6 + $0x20] sm:$0xff] %vm826_vm0, %v803_v42 }
 0x1e1   :  { %v819_v46 = vpop.xlane.xlu1 %818 }
 0x1e2   :  { %839 = vst.msk [vmem:[%s1585_s6 + $0x60] sm:$0xff] %vm826_vm0, %v819_v46  ;;  %v809_v47 = vpop.xlane.xlu0 %808 }
 0x1e3   :  { %834 = vst.msk [vmem:[%s1585_s6 + $0x38] sm:$0xff] %vm826_vm0, %v809_v47 }
 0x1e5   :  { %v823_v15 = vpop.xlane.xlu1 %822 }
 0x1e6   :  { %841 = vst.msk [vmem:[%s1585_s6 + $0x70] sm:$0xff] %vm826_vm0, %v823_v15 }
 0x1e7   :  { %v805_v22 = vpop.xlane.xlu0 %804 }
 0x1e8   :  { %832 = vst.msk [vmem:[%s1585_s6 + $0x28] sm:$0xff] %vm826_vm0, %v805_v22 }
 0x1eb   :  { %v821_v16 = vpop.xlane.xlu0 %820 }
 0x1ec   :  { %840 = vst.msk [vmem:[%s1585_s6 + $0x68] sm:$0xff] %vm826_vm0, %v821_v16 }
 0x1ef   :  { %v825_v54 = vpop.xlane.xlu0 %824 }
 0x1f0   :  { %842 = vst.msk [vmem:[%s1585_s6 + $0x78] sm:$0xff] %vm826_vm0, %v825_v54 }

</bundles_post_ra>
